<compile_context>
chip_gen: v7x
topology: tpu7x:2x2x1
jax: 0.10.0
libtpu: 0.0.40
codegen_flags: <defaults>
</compile_context>

<pallas_src>
import functools

import jax
import jax.numpy as jnp
from jax.experimental import pallas as pl
from jax.experimental.pallas import tpu as pltpu


def _round_up(x: int, m: int) -> int:
    return ((x + m - 1) // m) * m


def _cdiv(a: int, b: int) -> int:
    return (a + b - 1) // b


def _focal_loss_kernel(logits_ref, targets_ref, out_ref, *,
                       alpha, gamma, n, tile_n, tiles_per_part):
    p = pl.program_id(0)      # parallel partition (megacore split on v7x)
    t = pl.program_id(1)      # sequential row-tile index inside the partition

    # The output block index depends only on p, so it stays resident in VMEM
    # across the whole inner t axis -> use it as the accumulator.
    @pl.when(t == 0)
    def _():
        out_ref[...] = jnp.zeros_like(out_ref)

    logits = logits_ref[...].astype(jnp.float32)         # (tile_n, C)
    tgt = targets_ref[...]                                # (tile_n, 1) int32

    # Numerically stable log-softmax denominator (per-row logsumexp).
    m = jnp.max(logits, axis=-1, keepdims=True)
    lse = m + jnp.log(jnp.sum(jnp.exp(logits - m), axis=-1, keepdims=True))

    # Gather the target-class logit via a one-hot compare (no dynamic lane
    # gather on TPU).
    class_ids = jax.lax.broadcasted_iota(jnp.int32, logits.shape, 1)
    tgt_logit = jnp.sum(jnp.where(class_ids == tgt, logits, 0.0),
                        axis=-1, keepdims=True)

    ce = lse - tgt_logit                                  # (tile_n, 1)
    pt = jnp.exp(-ce)
    # Clamp tiny fp-rounding negatives so pow() can't produce NaN.
    one_minus_pt = jnp.maximum(1.0 - pt, 0.0)

    g = float(gamma)
    if g == 0.0:
        w = jnp.ones_like(one_minus_pt)
    elif g.is_integer() and 1.0 <= g <= 4.0:
        # Repeated multiplies instead of pow() (saves EUP log+exp per element).
        w = one_minus_pt
        for _ in range(int(g) - 1):
            w = w * one_minus_pt
    else:
        w = jnp.power(one_minus_pt, g)

    focal = (alpha * w) * ce                              # (tile_n, 1)

    # Mask rows that come from padding (N not divisible by the tile grid).
    row0 = (p * tiles_per_part + t) * tile_n
    rows = row0 + jax.lax.broadcasted_iota(jnp.int32, focal.shape, 0)
    focal = jnp.where(rows < n, focal, 0.0)

    out_ref[0] += focal


def focal_loss(inputs, targets, *, alpha=1.0, gamma=2.0, reduction='mean',
               tile_n=None):
    """inputs: (N, C) float logits (f32 or bf16); targets: (N,) class indices."""
    n, c = inputs.shape
    itemsize = jnp.dtype(inputs.dtype).itemsize

    # Row-tile size: a multiple of 32 sublanes (covers f32 / bf16 / 8-bit
    # packing), sized so one logits block is ~2 MiB -> the double-buffered
    # pipeline comfortably fits scoped VMEM on v5e (16 MiB), v6e (32 MiB) and
    # v7x (64 MiB physical).
    # TODO(synk): for vocab-scale C, add an inner class-tiled grid axis with an
    # online logsumexp instead of requiring the full class row in one block.
    if tile_n is None:
        target_block_bytes = 2 * 1024 * 1024
        tile_n = target_block_bytes // max(1, c * itemsize)
        tile_n = max(32, min(1024, tile_n))
    tile_n = _round_up(min(int(tile_n), _round_up(n, 32)), 32)

    total_tiles = _cdiv(n, tile_n)
    # Up to two partitions so the sample axis can be split across both
    # TensorCores on v7x ("parallel" leading grid axis); harmless elsewhere.
    num_parts = max(1, min(2, total_tiles))
    tiles_per_part = _cdiv(total_tiles, num_parts)
    n_padded = num_parts * tiles_per_part * tile_n

    # Keep logits in their native dtype (no wrapper-side f32 copy in HBM);
    # the cast to f32 happens inside the kernel on the VMEM tile.
    logits = inputs
    tgt2d = targets.reshape(n, 1).astype(jnp.int32)
    if n_padded != n:
        logits = jnp.pad(logits, ((0, n_padded - n), (0, 0)))
        tgt2d = jnp.pad(tgt2d, ((0, n_padded - n), (0, 0)))

    kernel = functools.partial(
        _focal_loss_kernel, alpha=float(alpha), gamma=float(gamma), n=n,
        tile_n=tile_n, tiles_per_part=tiles_per_part)

    partials = pl.pallas_call(
        kernel,
        out_shape=jax.ShapeDtypeStruct((num_parts, tile_n, 1), jnp.float32),
        grid=(num_parts, tiles_per_part),
        in_specs=[
            pl.BlockSpec((tile_n, c), lambda p, t: (p * tiles_per_part + t, 0)),
            pl.BlockSpec((tile_n, 1), lambda p, t: (p * tiles_per_part + t, 0)),
        ],
        out_specs=pl.BlockSpec((1, tile_n, 1), lambda p, t: (p, 0, 0)),
        compiler_params=pltpu.CompilerParams(
            dimension_semantics=("parallel", "arbitrary"),
            vmem_limit_bytes=32 * 1024 * 1024),
    )(logits, tgt2d)

    total = jnp.sum(partials)          # tiny cross-lane reduce left to XLA
    if reduction == 'mean':
        return total / jnp.float32(n)  # divide by the TRUE sample count
    return total


def _focal_loss_ref(inputs, targets, *, alpha=1.0, gamma=2.0, reduction='mean'):
    """Pure-JAX reference mirroring torch F.cross_entropy + focal weighting."""
    logp = jax.nn.log_softmax(inputs.astype(jnp.float32), axis=-1)
    ce = -jnp.take_along_axis(logp, targets[:, None].astype(jnp.int32),
                              axis=-1)[:, 0]
    pt = jnp.exp(-ce)
    focal = alpha * (1.0 - pt) ** gamma * ce
    return focal.mean() if reduction == 'mean' else focal.sum()


if __name__ == "__main__":
    key = jax.random.PRNGKey(0)
    k1, k2, k3, k4, k5, k6 = jax.random.split(key, 6)

    # 1) Basic f32 case, mean reduction, gamma=2 (single tile).
    N, C = 128, 16
    logits = jax.random.normal(k1, (N, C), dtype=jnp.float32)
    targets = jax.random.randint(k2, (N,), 0, C, dtype=jnp.int32)
    out = jax.block_until_ready(focal_loss(logits, targets, alpha=1.0,
                                           gamma=2.0, reduction='mean'))
    ref = _focal_loss_ref(logits, targets, alpha=1.0, gamma=2.0,
                          reduction='mean')
    assert jnp.allclose(out, ref, rtol=1e-5, atol=1e-6), (out, ref)

    # 2) Multi-tile grid with padding/masking (N not a multiple of the tile),
    #    sum reduction, 2-partition parallel axis.
    N2, C2 = 300, 16
    logits2 = jax.random.normal(k3, (N2, C2), dtype=jnp.float32)
    targets2 = jax.random.randint(k4, (N2,), 0, C2, dtype=jnp.int32)
    out2 = jax.block_until_ready(
        focal_loss(logits2, targets2, reduction='sum', tile_n=64))
    ref2 = _focal_loss_ref(logits2, targets2, reduction='sum')
    assert jnp.allclose(out2, ref2, rtol=1e-5, atol=1e-4), (out2, ref2)

    # 3) Native bf16 logits streamed without a wrapper-side f32 copy.
    N3, C3 = 256, 32
    logits3 = jax.random.normal(k5, (N3, C3), dtype=jnp.bfloat16)
    targets3 = jax.random.randint(k6, (N3,), 0, C3, dtype=jnp.int32)
    out3 = jax.block_until_ready(focal_loss(logits3, targets3))
    ref3 = _focal_loss_ref(logits3, targets3)
    assert jnp.allclose(out3, ref3, rtol=1e-4, atol=1e-5), (out3, ref3)

    # 4) Non-integer gamma exercises the pow() fallback path.
    out4 = jax.block_until_ready(focal_loss(logits, targets, gamma=1.5))
    ref4 = _focal_loss_ref(logits, targets, gamma=1.5)
    assert jnp.allclose(out4, ref4, rtol=1e-5, atol=1e-6), (out4, ref4)

    print("KERNEL_OK")
</pallas_src>

<mosaic_0001>
module attributes {stable_mosaic.version = 11 : i64} {
  func.func @_focal_loss_kernel(%arg0: i32, %arg1: i32, %arg2: memref<128x16xf32, #tpu.memory_space<vmem>>, %arg3: memref<128x1xi32, #tpu.memory_space<vmem>>, %arg4: memref<1x128x1xf32, #tpu.memory_space<vmem>>) attributes {dimension_semantics = [#tpu.dimension_semantics<parallel>, #tpu.dimension_semantics<arbitrary>], iteration_bounds = array<i64: 1, 1>, scalar_prefetch = 0 : i64, scratch_operands = 0 : i64, tpu.core_type = #tpu.core_type<tc>, window_params = [{transform_indices = @transform_0, window_bounds = array<i64: 128, 16>}, {transform_indices = @transform_1, window_bounds = array<i64: 128, 1>}, {transform_indices = @transform_2, window_bounds = array<i64: 1, 128, 1>}]} {
    %c0_i32 = arith.constant 0 : i32
    %0 = arith.cmpi eq, %arg1, %c0_i32 : i32
    %1 = arith.extui %0 : i1 to i32
    %c0_i32_0 = arith.constant 0 : i32
    %2 = arith.cmpi ne, %1, %c0_i32_0 : i32
    scf.if %2 {
      %cst_19 = arith.constant 0.000000e+00 : f32
      %49 = vector.broadcast %cst_19 : f32 to vector<1x128x1xf32>
      %c0_20 = arith.constant 0 : index
      %c0_21 = arith.constant 0 : index
      %c0_22 = arith.constant 0 : index
      %50 = vector.load %arg4[%c0_20, %c0_21, %c0_22] : memref<1x128x1xf32, #tpu.memory_space<vmem>>, vector<1x128x1xf32>
      tpu.vector_store %arg4[%c0_20, %c0_21, %c0_22], %49 {strides = array<i32>} : memref<1x128x1xf32, #tpu.memory_space<vmem>>, vector<1x128x1xf32>,
    } else {
    }
    %c0 = arith.constant 0 : index
    %c0_1 = arith.constant 0 : index
    %3 = vector.load %arg2[%c0, %c0_1] : memref<128x16xf32, #tpu.memory_space<vmem>>, vector<128x16xf32>
    %c0_2 = arith.constant 0 : index
    %c0_3 = arith.constant 0 : index
    %4 = vector.load %arg3[%c0_2, %c0_3] : memref<128x1xi32, #tpu.memory_space<vmem>>, vector<128x1xi32>
    %cst = arith.constant dense<0xFF800000> : vector<128xf32>
    %5 = vector.multi_reduction <maximumf>, %3, %cst [1] : vector<128x16xf32> to vector<128xf32>
    %6 = vector.shape_cast %5 : vector<128xf32> to vector<128x1xf32>
    %7 = vector.broadcast %6 : vector<128x1xf32> to vector<128x16xf32>
    %8 = arith.subf %3, %7 : vector<128x16xf32>
    %9 = math.exp %8 : vector<128x16xf32>
    %cst_4 = arith.constant dense<0.000000e+00> : vector<128xf32>
    %10 = vector.multi_reduction <add>, %9, %cst_4 [1] : vector<128x16xf32> to vector<128xf32>
    %11 = vector.shape_cast %10 : vector<128xf32> to vector<128x1xf32>
    %12 = math.log %11 : vector<128x1xf32>
    %13 = arith.addf %6, %12 : vector<128x1xf32>
    %14 = tpu.iota {dimensions = array<i32: 1>} : vector<128x16xi32>
    %15 = vector.broadcast %4 : vector<128x1xi32> to vector<128x16xi32>
    %16 = arith.cmpi eq, %14, %15 : vector<128x16xi32>
    %cst_5 = arith.constant 0.000000e+00 : f32
    %17 = vector.broadcast %cst_5 : f32 to vector<128x16xf32>
    %18 = arith.select %16, %3, %17 : vector<128x16xi1>, vector<128x16xf32>
    %cst_6 = arith.constant dense<0.000000e+00> : vector<128xf32>
    %19 = vector.multi_reduction <add>, %18, %cst_6 [1] : vector<128x16xf32> to vector<128xf32>
    %20 = vector.shape_cast %19 : vector<128xf32> to vector<128x1xf32>
    %21 = arith.subf %13, %20 : vector<128x1xf32>
    %cst_7 = arith.constant 0.000000e+00 : f32
    %22 = vector.broadcast %cst_7 : f32 to vector<128x1xf32>
    %23 = arith.subf %22, %21 : vector<128x1xf32>
    %24 = math.exp %23 : vector<128x1xf32>
    %cst_8 = arith.constant 1.000000e+00 : f32
    %25 = vector.broadcast %cst_8 : f32 to vector<128x1xf32>
    %26 = arith.subf %25, %24 : vector<128x1xf32>
    %cst_9 = arith.constant 0.000000e+00 : f32
    %27 = vector.broadcast %cst_9 : f32 to vector<128x1xf32>
    %28 = arith.maximumf %26, %27 : vector<128x1xf32>
    %29 = arith.mulf %28, %28 : vector<128x1xf32>
    %cst_10 = arith.constant 1.000000e+00 : f32
    %30 = vector.broadcast %cst_10 : f32 to vector<128x1xf32>
    %31 = arith.mulf %30, %29 : vector<128x1xf32>
    %32 = arith.mulf %31, %21 : vector<128x1xf32>
    %c1_i32 = arith.constant 1 : i32
    %33 = arith.muli %arg0, %c1_i32 : i32
    %34 = arith.addi %33, %arg1 : i32
    %c128_i32 = arith.constant 128 : i32
    %35 = arith.muli %34, %c128_i32 : i32
    %36 = tpu.iota {dimensions = array<i32: 0>} : vector<128x1xi32>
    %37 = vector.broadcast %35 : i32 to vector<128x1xi32>
    %38 = arith.addi %37, %36 : vector<128x1xi32>
    %c128_i32_11 = arith.constant 128 : i32
    %39 = vector.broadcast %c128_i32_11 : i32 to vector<128x1xi32>
    %40 = arith.cmpi slt, %38, %39 : vector<128x1xi32>
    %cst_12 = arith.constant 0.000000e+00 : f32
    %41 = vector.broadcast %cst_12 : f32 to vector<128x1xf32>
    %42 = arith.select %40, %32, %41 : vector<128x1xi1>, vector<128x1xf32>
    %c0_13 = arith.constant 0 : index
    %c0_14 = arith.constant 0 : index
    %c0_15 = arith.constant 0 : index
    %43 = vector.load %arg4[%c0_13, %c0_14, %c0_15] : memref<1x128x1xf32, #tpu.memory_space<vmem>>, vector<1x128x1xf32>
    %44 = vector.shape_cast %43 : vector<1x128x1xf32> to vector<128x1xf32>
    %45 = arith.addf %44, %42 : vector<128x1xf32>
    %c0_16 = arith.constant 0 : index
    %c0_17 = arith.constant 0 : index
    %c0_18 = arith.constant 0 : index
    %46 = vector.load %arg4[%c0_16, %c0_17, %c0_18] : memref<1x128x1xf32, #tpu.memory_space<vmem>>, vector<1x128x1xf32>
    %47 = vector.shape_cast %46 : vector<1x128x1xf32> to vector<128x1xf32>
    %48 = vector.shape_cast %45 : vector<128x1xf32> to vector<1x128x1xf32>
    tpu.vector_store %arg4[%c0_16, %c0_17, %c0_18], %48 {strides = array<i32>} : memref<1x128x1xf32, #tpu.memory_space<vmem>>, vector<1x128x1xf32>,
    return
  }
  func.func @transform_0(%arg0: i32, %arg1: i32) -> (i32, i32) {
    %c1_i32 = arith.constant 1 : i32
    %0 = arith.muli %arg0, %c1_i32 : i32
    %1 = arith.addi %0, %arg1 : i32
    %c0_i32 = arith.constant 0 : i32
    %c0_i32_0 = arith.constant 0 : i32
    return %1, %c0_i32 : i32, i32
  }
  func.func @transform_1(%arg0: i32, %arg1: i32) -> (i32, i32) {
    %c1_i32 = arith.constant 1 : i32
    %0 = arith.muli %arg0, %c1_i32 : i32
    %1 = arith.addi %0, %arg1 : i32
    %c0_i32 = arith.constant 0 : i32
    %c0_i32_0 = arith.constant 0 : i32
    return %1, %c0_i32 : i32, i32
  }
  func.func @transform_2(%arg0: i32, %arg1: i32) -> (i32, i32, i32) {
    %c0_i32 = arith.constant 0 : i32
    %c0_i32_0 = arith.constant 0 : i32
    %c0_i32_1 = arith.constant 0 : i32
    return %arg0, %c0_i32, %c0_i32_0 : i32, i32, i32
  }
}

</mosaic_0001>

<bundles_post_ra>
// kernel: tpu_custom_call.1
= control target key start
LH: loop header
LB: loop body
LE: loop exit
PB: predicated region body
PF: predicated region fallthrough
CT: control target
= control target key end

     0   :  { %vm108_vm0 = vcmask 130048   ;;  %v792_v3 = vmov 0   ;;  %v301_v63 = vlaneseq  ;;  %vm59_vm7 = vcmask 7168   ;;  %s1361_s0 = inlined_call_operand.vmem [shape: f32[128,16], index: 0, kind: input, shape index: {}]   ;;  %s1362_s1 = inlined_call_operand.vmem [shape: s32[128,1], index: 1, kind: input, shape index: {}]   ;;  %s1363_s2 = inlined_call_operand.vmem [shape: f32[1,128,1], index: 2, kind: output, shape index: {}]  }
   0x1   :  { %v812_v0 = vld [vmem:[%s1361_s0 + $0x10] sm:$0xff]  ;;  %v817_v1 = vld [vmem:[%s1361_s0] sm:$0xff]  ;;  %v822_v2 = vld [vmem:[%s1361_s0 + $0x18] sm:$0xff]  ;;  %695 = vset.pattern.permute.xlu1 %v792_v3  ;;  %694 = vset.pattern.permute.xlu0 %v792_v3 }
   0x2   :  { %v115_v4 = vsel %vm108_vm0, %v812_v0, -inf  ;;  %v109_v5 = vsel %vm108_vm0, %v817_v1, -inf  ;;  %v831_v6 = vld [vmem:[%s1361_s0 + $0x8] sm:$0xff]  ;;  %v118_v7 = vsel %vm108_vm0, %v822_v2, -inf  ;;  %v845_v10 = vld [vmem:[%s1361_s0 + $0x20] sm:$0xff]  ;;  %v854_v13 = vld [vmem:[%s1361_s0 + $0x38] sm:$0xff] }
   0x3   :  { %116 = vmax.xlane.f32.xlu1 %v115_v4  ;;  %110 = vmax.xlane.f32.xlu0 %v109_v5  ;;  %v112_v8 = vsel %vm108_vm0, %v831_v6, -inf  ;;  %v840_v9 = vld [vmem:[%s1361_s0 + $0x28] sm:$0xff]  ;;  %v121_v12 = vsel %vm108_vm0, %v845_v10, -inf  ;;  %v859_v14 = vld [vmem:[%s1361_s0 + $0x30] sm:$0xff]  ;;  %v130_v15 = vsel %vm108_vm0, %v854_v13, -inf  ;;  %v873_v18 = vld [vmem:[%s1361_s0 + $0x40] sm:$0xff] }
   0x4   :  { %v124_v11 = vsel %vm108_vm0, %v840_v9, -inf  ;;  %v127_v16 = vsel %vm108_vm0, %v859_v14, -inf  ;;  %v868_v17 = vld [vmem:[%s1361_s0 + $0x48] sm:$0xff]  ;;  %v133_v20 = vsel %vm108_vm0, %v873_v18, -inf  ;;  %v882_v21 = vld [vmem:[%s1361_s0 + $0x58] sm:$0xff]  ;;  %v887_v22 = vld [vmem:[%s1361_s0 + $0x50] sm:$0xff] }
   0x5   :  { %v136_v19 = vsel %vm108_vm0, %v868_v17, -inf  ;;  %v142_v23 = vsel %vm108_vm0, %v882_v21, -inf  ;;  %v139_v24 = vsel %vm108_vm0, %v887_v22, -inf  ;;  %v896_v25 = vld [vmem:[%s1361_s0 + $0x68] sm:$0xff]  ;;  %v901_v26 = vld [vmem:[%s1361_s0 + $0x60] sm:$0xff]  ;;  %v910_v29 = vld [vmem:[%s1361_s0 + $0x78] sm:$0xff] }
   0x6   :  { %v148_v27 = vsel %vm108_vm0, %v896_v25, -inf  ;;  %v145_v28 = vsel %vm108_vm0, %v901_v26, -inf  ;;  %v915_v30 = vld [vmem:[%s1361_s0 + $0x70] sm:$0xff]  ;;  %v154_v31 = vsel %vm108_vm0, %v910_v29, -inf  ;;  %v93_v33 = vld [vmem:[%s1362_s1 + $0x8] sm:$0xff]  ;;  %v92_v35 = vld [vmem:[%s1362_s1] sm:$0xff] }
   0x7   :  { %119 = vmax.xlane.f32.xlu1 %v118_v7  ;;  %113 = vmax.xlane.f32.xlu0 %v112_v8  ;;  %v151_v32 = vsel %vm108_vm0, %v915_v30, -inf  ;;  %v94_v34 = vld [vmem:[%s1362_s1 + $0x10] sm:$0xff]  ;;  %v95_v36 = vld [vmem:[%s1362_s1 + $0x18] sm:$0xff]  ;;  %v101_v37 = vld [vmem:[%s1362_s1 + $0x48] sm:$0xff]  ;;  %v999_v4 = vand.u32 127, %v301_v63 }
   0x8   :  { %v96_v38 = vld [vmem:[%s1362_s1 + $0x20] sm:$0xff]  ;;  %v103_v39 = vld [vmem:[%s1362_s1 + $0x58] sm:$0xff]  ;;  %v97_v40 = vld [vmem:[%s1362_s1 + $0x28] sm:$0xff] }
   0x9   :  { %v105_v41 = vld [vmem:[%s1362_s1 + $0x68] sm:$0xff]  ;;  %v98_v42 = vld [vmem:[%s1362_s1 + $0x30] sm:$0xff]  ;;  %v107_v43 = vld [vmem:[%s1362_s1 + $0x78] sm:$0xff] }
   0xa   :  { %v99_v44 = vld [vmem:[%s1362_s1 + $0x38] sm:$0xff]  ;;  %v100_v45 = vld [vmem:[%s1362_s1 + $0x40] sm:$0xff]  ;;  %v102_v46 = vld [vmem:[%s1362_s1 + $0x50] sm:$0xff] }
   0xb   :  { %125 = vmax.xlane.f32.xlu1 %v124_v11  ;;  %122 = vmax.xlane.f32.xlu0 %v121_v12  ;;  %v104_v47 = vld [vmem:[%s1362_s1 + $0x60] sm:$0xff]  ;;  %v106_v48 = vld [vmem:[%s1362_s1 + $0x70] sm:$0xff] }
   0xf   :  { %131 = vmax.xlane.f32.xlu1 %v130_v15  ;;  %128 = vmax.xlane.f32.xlu0 %v127_v16 }
  0x13   :  { %137 = vmax.xlane.f32.xlu1 %v136_v19  ;;  %134 = vmax.xlane.f32.xlu0 %v133_v20 }
  0x17   :  { %143 = vmax.xlane.f32.xlu1 %v142_v23  ;;  %140 = vmax.xlane.f32.xlu0 %v139_v24 }
  0x1b   :  { %149 = vmax.xlane.f32.xlu1 %v148_v27  ;;  %146 = vmax.xlane.f32.xlu0 %v145_v28 }
  0x1f   :  { %155 = vmax.xlane.f32.xlu1 %v154_v31  ;;  %152 = vmax.xlane.f32.xlu0 %v151_v32 }
  0x30   :  { %307 = vperm.xlu1 %695, %v93_v33  }
  0x34   :  { %310 = vperm.xlu1 %695, %v94_v34  }
  0x35   :  { %304 = vperm.xlu0 %694, %v92_v35  }
  0x38   :  { %313 = vperm.xlu1 %695, %v95_v36  }
  0x39   :  { %331 = vperm.xlu0 %694, %v101_v37  }
  0x3c   :  { %316 = vperm.xlu1 %695, %v96_v38  }
  0x3d   :  { %337 = vperm.xlu0 %694, %v103_v39  }
  0x40   :  { %319 = vperm.xlu1 %695, %v97_v40  }
  0x41   :  { %343 = vperm.xlu0 %694, %v105_v41  }
  0x44   :  { %322 = vperm.xlu1 %695, %v98_v42  }
  0x45   :  { %349 = vperm.xlu0 %694, %v107_v43  }
  0x48   :  { %325 = vperm.xlu1 %695, %v99_v44  }
  0x4c   :  { %328 = vperm.xlu1 %695, %v100_v45  }
  0x50   :  { %334 = vperm.xlu1 %695, %v102_v46  }
  0x54   :  { %340 = vperm.xlu1 %695, %v104_v47  }
  0x58   :  { %346 = vperm.xlu1 %695, %v106_v48  }
  0x90   :  { %v969_v49 = vpop.xlane.xlu1 %116  ;;  %v971_v50 = vpop.xlane.xlu0 %110 }
  0x91   :  { %v159_v11 = vsub.f32 %v812_v0, %v969_v49  ;;  %v157_v12 = vsub.f32 %v817_v1, %v971_v50 }
  0x93   :  { %v177_v24 = vmul.f32 1.442695, %v159_v11  ;;  %v173_v28 = vmul.f32 1.442695, %v157_v12 }
  0x94   :  { %v973_v51 = vpop.xlane.xlu1 %119  ;;  %v975_v52 = vpop.xlane.xlu0 %113 }
  0x95   :  { %v158_v5 = vsub.f32 %v831_v6, %v975_v52  ;;  %v160_v27 = vsub.f32 %v822_v2, %v973_v51 }
  0x97   :  { %v175_v15 = vmul.f32 1.442695, %v158_v5  ;;  %v179_v35 = vmul.f32 1.442695, %v160_v27 }
  0x98   :  { %v977_v53 = vpop.xlane.xlu1 %125  ;;  %v979_v54 = vpop.xlane.xlu0 %122 }
  0x99   :  { %696 = vpow2.f32 %v175_v15  ;;  %v161_v31 = vsub.f32 %v845_v10, %v979_v54  ;;  %v162_v36 = vsub.f32 %v840_v9, %v977_v53 }
  0x9a   :  { %698 = vpow2.f32 %v177_v24 }
  0x9b   :  { %700 = vpow2.f32 %v173_v28  ;;  %v181_v37 = vmul.f32 1.442695, %v161_v31 }
  0x9c   :  { %v981_v55 = vpop.xlane.xlu1 %131  ;;  %v983_v56 = vpop.xlane.xlu0 %128  ;;  %702 = vpow2.f32 %v179_v35 }
  0x9d   :  { %v163_v38 = vsub.f32 %v859_v14, %v983_v56  ;;  %v164_v42 = vsub.f32 %v854_v13, %v981_v55  ;;  %704 = vpow2.f32 %v181_v37 }
  0x9f   :  { %v185_v43 = vmul.f32 1.442695, %v163_v38  ;;  %v187_v48 = vmul.f32 1.442695, %v164_v42 }
  0xa0   :  { %v985_v57 = vpop.xlane.xlu1 %137  ;;  %v987_v58 = vpop.xlane.xlu0 %134 }
  0xa1   :  { %v165_v44 = vsub.f32 %v873_v18, %v987_v58  ;;  %v166_v63 = vsub.f32 %v868_v17, %v985_v57 }
  0xa3   :  { %v697_v46 = vpop.eup %696  ;;  %v189_v5 = vmul.f32 1.442695, %v165_v44 }
  0xa4   :  { %v989_v59 = vpop.xlane.xlu1 %143  ;;  %v991_v60 = vpop.xlane.xlu0 %140  ;;  %v208_v15 = vsel %vm108_vm0, %v697_v46, 0.0  ;;  %v793_v46 = vmov 0.0  }
  0xa5   :  { %61 = vst.msk [vmem:[%s1363_s2 + $0x8] sm:$0xff] %vm59_vm7, %v793_v46  ;;  %60 = vst.msk [vmem:[%s1363_s2] sm:$0xff] %vm59_vm7, %v793_v46 }
  0xa6   :  { %62 = vst.msk [vmem:[%s1363_s2 + $0x10] sm:$0xff] %vm59_vm7, %v793_v46  ;;  %63 = vst.msk [vmem:[%s1363_s2 + $0x18] sm:$0xff] %vm59_vm7, %v793_v46 }
  0xa7   :  { %64 = vst.msk [vmem:[%s1363_s2 + $0x20] sm:$0xff] %vm59_vm7, %v793_v46  ;;  %65 = vst.msk [vmem:[%s1363_s2 + $0x28] sm:$0xff] %vm59_vm7, %v793_v46 }
  0xa8   :  { %v993_v61 = vpop.xlane.xlu1 %149  ;;  %v995_v62 = vpop.xlane.xlu0 %146  ;;  %66 = vst.msk [vmem:[%s1363_s2 + $0x30] sm:$0xff] %vm59_vm7, %v793_v46  ;;  %67 = vst.msk [vmem:[%s1363_s2 + $0x38] sm:$0xff] %vm59_vm7, %v793_v46 }
  0xa9   :  { %v169_v24 = vsub.f32 %v901_v26, %v995_v62  ;;  %68 = vst.msk [vmem:[%s1363_s2 + $0x40] sm:$0xff] %vm59_vm7, %v793_v46  ;;  %69 = vst.msk [vmem:[%s1363_s2 + $0x48] sm:$0xff] %vm59_vm7, %v793_v46 }
  0xaa   :  { %70 = vst.msk [vmem:[%s1363_s2 + $0x50] sm:$0xff] %vm59_vm7, %v793_v46  ;;  %71 = vst.msk [vmem:[%s1363_s2 + $0x58] sm:$0xff] %vm59_vm7, %v793_v46 }
  0xab   :  { %72 = vst.msk [vmem:[%s1363_s2 + $0x60] sm:$0xff] %vm59_vm7, %v793_v46  ;;  %73 = vst.msk [vmem:[%s1363_s2 + $0x68] sm:$0xff] %vm59_vm7, %v793_v46 }
  0xac   :  { %v997_v3 = vpop.xlane.xlu1 %155  ;;  %v1003_v7 = vpop.xlane.xlu0 %152  ;;  %74 = vst.msk [vmem:[%s1363_s2 + $0x70] sm:$0xff] %vm59_vm7, %v793_v46  ;;  %75 = vst.msk [vmem:[%s1363_s2 + $0x78] sm:$0xff] %vm59_vm7, %v793_v46 }
  0xb0   :  { %v308_v8 = vpop.permute.xlu1 %307 }
  0xb1   :  { %vm352_vm1 = vcmp.eq.s32.totalorder %v999_v4, %v308_v8  ;;  %v167_v8 = vsub.f32 %v887_v22, %v991_v60 }
  0xb2   :  { %v368_v16 = vsel %vm352_vm1, %v831_v6, 0.0 }
  0xb3   :  { %v386_v19 = vsel %vm108_vm0, %v368_v16, 0.0 }
  0xb4   :  { %v311_v20 = vpop.permute.xlu1 %310  ;;  %387 = vadd.xlane.f32.xlu1 %v386_v19  ;;  %v305_v23 = vpop.permute.xlu0 %304  ;;  %v191_v19 = vmul.f32 1.442695, %v166_v63 }
  0xb5   :  { %vm353_vm2 = vcmp.eq.s32.totalorder %v999_v4, %v311_v20  ;;  %vm351_vm3 = vcmp.eq.s32.totalorder %v999_v4, %v305_v23  ;;  %v168_v20 = vsub.f32 %v882_v21, %v989_v59  ;;  %v193_v23 = vmul.f32 1.442695, %v167_v8 }
  0xb6   :  { %v367_v6 = vsel %vm351_vm3, %v817_v1, 0.0  ;;  %v369_v34 = vsel %vm353_vm2, %v812_v0, 0.0  ;;  %v183_v0 = vmul.f32 1.442695, %v162_v36 }
  0xb7   :  { %v383_v32 = vsel %vm108_vm0, %v367_v6, 0.0  ;;  %v389_v40 = vsel %vm108_vm0, %v369_v34, 0.0  ;;  %v195_v6 = vmul.f32 1.442695, %v168_v20  ;;  %v171_v34 = vsub.f32 %v915_v30, %v1003_v7 }
  0xb8   :  { %v314_v33 = vpop.permute.xlu1 %313  ;;  %384 = vadd.xlane.f32.xlu0 %v383_v32  ;;  %706 = vpow2.f32 %v183_v0  ;;  %v170_v32 = vsub.f32 %v896_v25, %v993_v61 }
  0xb9   :  { %vm354_vm4 = vcmp.eq.s32.totalorder %v999_v4, %v314_v33  ;;  %708 = vpow2.f32 %v185_v43  ;;  %v197_v33 = vmul.f32 1.442695, %v169_v24  ;;  %v332_v24 = vpop.permute.xlu0 %331 }
  0xba   :  { %v370_v1 = vsel %vm354_vm4, %v822_v2, 0.0  ;;  %710 = vpow2.f32 %v187_v48  ;;  %vm360_vm11 = vcmp.eq.s32.totalorder %v999_v4, %v332_v24 }
  0xbb   :  { %v392_v39 = vsel %vm108_vm0, %v370_v1, 0.0  ;;  %712 = vpow2.f32 %v189_v5 }
  0xbc   :  { %v317_v41 = vpop.permute.xlu1 %316  ;;  %393 = vadd.xlane.f32.xlu1 %v392_v39  ;;  %390 = vadd.xlane.f32.xlu0 %v389_v40  ;;  %714 = vpow2.f32 %v191_v19  ;;  %v199_v39 = vmul.f32 1.442695, %v170_v32  ;;  %v172_v40 = vsub.f32 %v910_v29, %v997_v3 }
  0xbd   :  { %vm355_vm5 = vcmp.eq.s32.totalorder %v999_v4, %v317_v41  ;;  %716 = vpow2.f32 %v193_v23  ;;  %v201_v41 = vmul.f32 1.442695, %v171_v34  ;;  %v338_v32 = vpop.permute.xlu0 %337 }
  0xbe   :  { %v371_v2 = vsel %vm355_vm5, %v845_v10, 0.0  ;;  %v699_v10 = vpop.eup %698  ;;  %718 = vpow2.f32 %v195_v6  ;;  %vm362_vm13 = vcmp.eq.s32.totalorder %v999_v4, %v338_v32 }
  0xbf   :  { %v395_v45 = vsel %vm108_vm0, %v371_v2, 0.0  ;;  %v701_v16 = vpop.eup %700  ;;  %v211_v28 = vsel %vm108_vm0, %v699_v10, 0.0  ;;  %720 = vpow2.f32 %v197_v33  ;;  %v203_v2 = vmul.f32 1.442695, %v172_v40 }
  0xc0   :  { %v320_v47 = vpop.permute.xlu1 %319  ;;  %396 = vadd.xlane.f32.xlu0 %v395_v45  ;;  %v703_v27 = vpop.eup %702  ;;  %722 = vpow2.f32 %v199_v39  ;;  %v376_v40 = vsel %vm360_vm11, %v868_v17, 0.0 }
  0xc1   :  { %vm356_vm6 = vcmp.eq.s32.totalorder %v999_v4, %v320_v47  ;;  %v705_v31 = vpop.eup %704  ;;  %v214_v36 = vsel %vm108_vm0, %v703_v27, 0.0  ;;  %724 = vpow2.f32 %v201_v41  ;;  %v410_v41 = vsel %vm108_vm0, %v376_v40, 0.0 }
  0xc2   :  { %v372_v11 = vsel %vm356_vm6, %v840_v9, 0.0  ;;  %v205_v9 = vsel %vm108_vm0, %v701_v16, 0.0  ;;  %v707_v35 = vpop.eup %706  ;;  %v217_v37 = vsel %vm108_vm0, %v705_v31, 0.0  ;;  %726 = vpow2.f32 %v203_v2 }
  0xc3   :  { %v398_v12 = vsel %vm108_vm0, %v372_v11, 0.0  ;;  %v709_v38 = vpop.eup %708  ;;  %v220_v42 = vsel %vm108_vm0, %v707_v35, 0.0 }
  0xc4   :  { %399 = vadd.xlane.f32.xlu1 %v398_v12  ;;  %209 = vadd.xlane.f32.xlu0 %v208_v15  ;;  %v1056_v1 = vpop.permute.xlu1 %322  ;;  %v711_v0 = vpop.eup %710  ;;  %v223_v43 = vsel %vm108_vm0, %v709_v38, 0.0 }
  0xc5   :  { %v713_v44 = vpop.eup %712  ;;  %v226_v48 = vsel %vm108_vm0, %v711_v0, 0.0  ;;  %vm357_vm8 = vcmp.eq.s32.totalorder %v999_v4, %v1056_v1  ;;  %v344_v1 = vpop.permute.xlu0 %343 }
  0xc6   :  { %v715_v47 = vpop.eup %714  ;;  %v229_v63 = vsel %vm108_vm0, %v713_v44, 0.0  ;;  %v373_v6 = vsel %vm357_vm8, %v859_v14, 0.0  ;;  %vm364_vm15 = vcmp.eq.s32.totalorder %v999_v4, %v344_v1 }
  0xc7   :  { %v717_v5 = vpop.eup %716  ;;  %v232_v11 = vsel %vm108_vm0, %v715_v47, 0.0  ;;  %v401_v34 = vsel %vm108_vm0, %v373_v6, 0.0  ;;  %v380_v2 = vsel %vm364_vm15, %v896_v25, 0.0 }
  0xc8   :  { %206 = vadd.xlane.f32.xlu1 %v205_v9  ;;  %212 = vadd.xlane.f32.xlu0 %v211_v28  ;;  %v326_v45 = vpop.permute.xlu1 %325  ;;  %v719_v8 = vpop.eup %718  ;;  %v235_v10 = vsel %vm108_vm0, %v717_v5, 0.0 }
  0xc9   :  { %v721_v12 = vpop.eup %720  ;;  %v238_v19 = vsel %vm108_vm0, %v719_v8, 0.0  ;;  %vm358_vm9 = vcmp.eq.s32.totalorder %v999_v4, %v326_v45  ;;  %v350_v17 = vpop.permute.xlu0 %349 }
  0xca   :  { %v723_v16 = vpop.eup %722  ;;  %v241_v20 = vsel %vm108_vm0, %v721_v12, 0.0  ;;  %vm366_vm2 = vcmp.eq.s32.totalorder %v999_v4, %v350_v17 }
  0xcb   :  { %v725_v23 = vpop.eup %724  ;;  %v244_v9 = vsel %vm108_vm0, %v723_v16, 0.0  ;;  %v382_v45 = vsel %vm366_vm2, %v910_v29, 0.0 }
  0xcc   :  { %215 = vadd.xlane.f32.xlu1 %v214_v36  ;;  %218 = vadd.xlane.f32.xlu0 %v217_v37  ;;  %v329_v15 = vpop.permute.xlu1 %328  ;;  %v247_v28 = vsel %vm108_vm0, %v725_v23, 0.0  ;;  %v727_v31 = vpop.eup %726  ;;  %v374_v36 = vsel %vm358_vm9, %v854_v13, 0.0  ;;  %v428_v46 = vsel %vm108_vm0, %v382_v45, 0.0 }
  0xcd   :  { %vm359_vm10 = vcmp.eq.s32.totalorder %v999_v4, %v329_v15  ;;  %v250_v33 = vsel %vm108_vm0, %v727_v31, 0.0  ;;  %v404_v14 = vsel %vm108_vm0, %v374_v36, 0.0 }
  0xce   :  { %v375_v37 = vsel %vm359_vm10, %v873_v18, 0.0 }
  0xcf   :  { %v407_v38 = vsel %vm108_vm0, %v375_v37, 0.0 }
  0xd0   :  { %221 = vadd.xlane.f32.xlu1 %v220_v42  ;;  %224 = vadd.xlane.f32.xlu0 %v223_v43  ;;  %v335_v27 = vpop.permute.xlu1 %334  ;;  %v378_v42 = vsel %vm362_vm13, %v882_v21, 0.0  ;;  %v422_v21 = vsel %vm108_vm0, %v380_v2, 0.0 }
  0xd1   :  { %vm361_vm12 = vcmp.eq.s32.totalorder %v999_v4, %v335_v27  ;;  %v416_v43 = vsel %vm108_vm0, %v378_v42, 0.0 }
  0xd2   :  { %v377_v39 = vsel %vm361_vm12, %v887_v22, 0.0 }
  0xd3   :  { %v413_v18 = vsel %vm108_vm0, %v377_v39, 0.0 }
  0xd4   :  { %227 = vadd.xlane.f32.xlu1 %v226_v48  ;;  %230 = vadd.xlane.f32.xlu0 %v229_v63  ;;  %v341_v35 = vpop.permute.xlu1 %340 }
  0xd5   :  { %vm363_vm14 = vcmp.eq.s32.totalorder %v999_v4, %v341_v35 }
  0xd6   :  { %v379_v0 = vsel %vm363_vm14, %v901_v26, 0.0 }
  0xd7   :  { %v419_v22 = vsel %vm108_vm0, %v379_v0, 0.0 }
  0xd8   :  { %233 = vadd.xlane.f32.xlu1 %v232_v11  ;;  %236 = vadd.xlane.f32.xlu0 %v235_v10  ;;  %v347_v13 = vpop.permute.xlu1 %346 }
  0xd9   :  { %vm365_vm1 = vcmp.eq.s32.totalorder %v999_v4, %v347_v13 }
  0xda   :  { %v381_v44 = vsel %vm365_vm1, %v915_v30, 0.0 }
  0xdb   :  { %v425_v26 = vsel %vm108_vm0, %v381_v44, 0.0 }
  0xdc   :  { %239 = vadd.xlane.f32.xlu1 %v238_v19  ;;  %242 = vadd.xlane.f32.xlu0 %v241_v20 }
  0xe0   :  { %245 = vadd.xlane.f32.xlu1 %v244_v9  ;;  %248 = vadd.xlane.f32.xlu0 %v247_v28 }
  0xe4   :  { %251 = vadd.xlane.f32.xlu1 %v250_v33  ;;  %402 = vadd.xlane.f32.xlu0 %v401_v34 }
  0xe8   :  { %405 = vadd.xlane.f32.xlu1 %v404_v14  ;;  %408 = vadd.xlane.f32.xlu0 %v407_v38 }
  0xec   :  { %414 = vadd.xlane.f32.xlu0 %v413_v18  ;;  %411 = vadd.xlane.f32.xlu1 %v410_v41 }
  0xf0   :  { %420 = vadd.xlane.f32.xlu0 %v419_v22  ;;  %417 = vadd.xlane.f32.xlu1 %v416_v43 }
  0xf4   :  { %426 = vadd.xlane.f32.xlu0 %v425_v26  ;;  %423 = vadd.xlane.f32.xlu1 %v422_v21 }
  0xf8   :  { %429 = vadd.xlane.f32.xlu1 %v428_v46 }
 0x141   :  { %v388_v48 = vpop.xlane.xlu1 %387 }
 0x145   :  { %v385_v47 = vpop.xlane.xlu0 %384 }
 0x149   :  { %v391_v63 = vpop.xlane.xlu0 %390  ;;  %v394_v5 = vpop.xlane.xlu1 %393 }
 0x14d   :  { %v397_v30 = vpop.xlane.xlu0 %396 }
 0x151   :  { %v1166_v8 = vpop.xlane.xlu1 %399  ;;  %v210_v25 = vpop.xlane.xlu0 %209 }
 0x152   :  { %728 = vlog2.f32 %v210_v25 }
 0x155   :  { %v207_v4 = vpop.xlane.xlu1 %206  ;;  %v213_v11 = vpop.xlane.xlu0 %212 }
 0x156   :  { %730 = vlog2.f32 %v207_v4 }
 0x157   :  { %732 = vlog2.f32 %v213_v11 }
 0x159   :  { %v216_v10 = vpop.xlane.xlu1 %215  ;;  %v219_v12 = vpop.xlane.xlu0 %218 }
 0x15a   :  { %734 = vlog2.f32 %v216_v10 }
 0x15b   :  { %736 = vlog2.f32 %v219_v12 }
 0x15c   :  { %v729_v29 = vpop.eup %728 }
 0x15d   :  { %v256_v15 = vmul.f32 0.6931472, %v729_v29  ;;  %v222_v16 = vpop.xlane.xlu1 %221  ;;  %v225_v19 = vpop.xlane.xlu0 %224 }
 0x15e   :  { %738 = vlog2.f32 %v222_v16 }
 0x15f   :  { %v286_v20 = vadd.f32 %v256_v15, %v975_v52  ;;  %740 = vlog2.f32 %v225_v19 }
 0x160   :  { %v731_v23 = vpop.eup %730 }
 0x161   :  { %v733_v24 = vpop.eup %732  ;;  %v1169_v27 = vsub.f32 %v286_v20, %v388_v48  ;;  %v254_v9 = vmul.f32 0.6931472, %v731_v23  ;;  %v228_v28 = vpop.xlane.xlu1 %227 }
 0x162   :  { %v231_v31 = vpop.xlane.xlu0 %230  ;;  %v258_v6 = vmul.f32 0.6931472, %v733_v24  ;;  %742 = vlog2.f32 %v228_v28 }
 0x163   :  { %v448_v32 = vsub.f32 0.0, %v1169_v27  ;;  %v285_v33 = vadd.f32 %v254_v9, %v971_v50  ;;  %744 = vlog2.f32 %v231_v31 }
 0x164   :  { %v735_v34 = vpop.eup %734  ;;  %v287_v35 = vadd.f32 %v258_v6, %v969_v49 }
 0x165   :  { %v737_v36 = vpop.eup %736  ;;  %v465_v52 = vmul.f32 1.442695, %v448_v32  ;;  %v1174_v37 = vsub.f32 %v285_v33, %v385_v47  ;;  %v260_v14 = vmul.f32 0.6931472, %v735_v34  ;;  %v234_v38 = vpop.xlane.xlu1 %233 }
 0x166   :  { %v237_v1 = vpop.xlane.xlu0 %236  ;;  %v1176_v39 = vsub.f32 %v287_v35, %v391_v63  ;;  %v262_v40 = vmul.f32 0.6931472, %v737_v36  ;;  %746 = vlog2.f32 %v234_v38 }
 0x167   :  { %748 = vpow2.f32 %v465_v52  ;;  %v447_v13 = vsub.f32 0.0, %v1174_v37  ;;  %v288_v50 = vadd.f32 %v260_v14, %v973_v51 }
 0x168   :  { %v739_v18 = vpop.eup %738  ;;  %v449_v49 = vsub.f32 0.0, %v1176_v39  ;;  %v289_v41 = vadd.f32 %v262_v40, %v979_v54  ;;  %750 = vlog2.f32 %v237_v1 }
 0x169   :  { %v741_v0 = vpop.eup %740  ;;  %v463_v42 = vmul.f32 1.442695, %v447_v13  ;;  %v1182_v17 = vsub.f32 %v288_v50, %v394_v5  ;;  %v264_v22 = vmul.f32 0.6931472, %v739_v18  ;;  %v240_v43 = vpop.xlane.xlu1 %239  ;;  %v628_v18 = vld [vmem:[%s1363_s2 + $0x8] sm:$0xff] }
 0x16a   :  { %v243_v44 = vpop.xlane.xlu0 %242  ;;  %v467_v2 = vmul.f32 1.442695, %v449_v49  ;;  %v1184_v26 = vsub.f32 %v289_v41, %v397_v30  ;;  %752 = vlog2.f32 %v240_v43  ;;  %v266_v45 = vmul.f32 0.6931472, %v741_v0 }
 0x16b   :  { %754 = vpow2.f32 %v463_v42  ;;  %v450_v51 = vsub.f32 0.0, %v1182_v17  ;;  %v290_v21 = vadd.f32 %v264_v22, %v977_v53 }
 0x16c   :  { %756 = vpow2.f32 %v467_v2  ;;  %v451_v54 = vsub.f32 0.0, %v1184_v26  ;;  %v743_v46 = vpop.eup %742  ;;  %v291_v10 = vadd.f32 %v266_v45, %v983_v56 }
 0x16d   :  { %v469_v47 = vmul.f32 1.442695, %v450_v51  ;;  %v1190_v48 = vsub.f32 %v290_v21, %v1166_v8  ;;  %758 = vlog2.f32 %v243_v44  ;;  %v246_v63 = vpop.xlane.xlu1 %245  ;;  %v745_v30 = vpop.eup %744  ;;  %v268_v53 = vmul.f32 0.6931472, %v743_v46 }
 0x16e   :  { %v249_v5 = vpop.xlane.xlu0 %248  ;;  %v471_v25 = vmul.f32 1.442695, %v451_v54  ;;  %760 = vlog2.f32 %v246_v63  ;;  %v270_v15 = vmul.f32 0.6931472, %v745_v30 }
 0x16f   :  { %762 = vpow2.f32 %v469_v47  ;;  %v452_v4 = vsub.f32 0.0, %v1190_v48  ;;  %v292_v56 = vadd.f32 %v268_v53, %v981_v55 }
 0x170   :  { %v747_v11 = vpop.eup %746  ;;  %764 = vpow2.f32 %v471_v25  ;;  %v293_v35 = vadd.f32 %v270_v15, %v987_v58 }
 0x171   :  { %v749_v12 = vpop.eup %748  ;;  %v473_v29 = vmul.f32 1.442695, %v452_v4  ;;  %v272_v16 = vmul.f32 0.6931472, %v747_v11  ;;  %766 = vlog2.f32 %v249_v5  ;;  %v252_v8 = vpop.xlane.xlu1 %251 }
 0x172   :  { %v403_v19 = vpop.xlane.xlu0 %402  ;;  %v751_v20 = vpop.eup %750  ;;  %v496_v23 = vsub.f32 1.0, %v749_v12  ;;  %768 = vlog2.f32 %v252_v8  ;;  %v629_v12 = vld [vmem:[%s1363_s2 + $0x10] sm:$0xff] }
 0x173   :  { %v1194_v24 = vsub.f32 %v291_v10, %v403_v19  ;;  %770 = vpow2.f32 %v473_v29  ;;  %v274_v9 = vmul.f32 0.6931472, %v751_v20  ;;  %v294_v52 = vadd.f32 %v272_v16, %v985_v57 }
 0x174   :  { %v753_v28 = vpop.eup %752  ;;  %v512_v31 = vmax.f32 %v496_v23, 0.0 }
 0x175   :  { %v453_v6 = vsub.f32 0.0, %v1194_v24  ;;  %v755_v32 = vpop.eup %754  ;;  %v276_v33 = vmul.f32 0.6931472, %v753_v28  ;;  %v406_v34 = vpop.xlane.xlu1 %405  ;;  %v295_v41 = vadd.f32 %v274_v9, %v991_v60 }
 0x176   :  { %v409_v36 = vpop.xlane.xlu0 %408  ;;  %v757_v14 = vpop.eup %756  ;;  %v528_v38 = vmul.f32 %v512_v31, %v512_v31  ;;  %v495_v1 = vsub.f32 1.0, %v755_v32  ;;  %v1200_v13 = vsub.f32 %v292_v56, %v406_v34  ;;  %v630_v32 = vld [vmem:[%s1363_s2 + $0x18] sm:$0xff] }
 0x177   :  { %v475_v40 = vmul.f32 1.442695, %v453_v6  ;;  %v759_v50 = vpop.eup %758  ;;  %v497_v55 = vsub.f32 1.0, %v757_v14  ;;  %v1205_v49 = vsub.f32 %v293_v35, %v409_v36  ;;  %v296_v58 = vadd.f32 %v276_v33, %v989_v59  ;;  %v631_v36 = vld [vmem:[%s1363_s2 + $0x20] sm:$0xff] }
 0x178   :  { %v761_v0 = vpop.eup %760  ;;  %v544_v57 = vmul.f32 %v528_v38, %v1169_v27  ;;  %v511_v42 = vmax.f32 %v495_v1, 0.0  ;;  %v278_v22 = vmul.f32 0.6931472, %v759_v50  ;;  %v454_v51 = vsub.f32 0.0, %v1200_v13  ;;  %v627_v27 = vld [vmem:[%s1363_s2] sm:$0xff] }
 0x179   :  { %772 = vpow2.f32 %v475_v40  ;;  %v763_v43 = vpop.eup %762  ;;  %v513_v44 = vmax.f32 %v497_v55, 0.0  ;;  %v280_v2 = vmul.f32 0.6931472, %v761_v0  ;;  %v455_v21 = vsub.f32 0.0, %v1205_v49  ;;  %v412_v54 = vpop.xlane.xlu1 %411 }
 0x17a   :  { %v415_v45 = vpop.xlane.xlu0 %414  ;;  %v765_v46 = vpop.eup %764  ;;  %v644_v47 = vadd.f32 %v628_v18, %v544_v57  ;;  %v527_v60 = vmul.f32 %v511_v42, %v511_v42  ;;  %v498_v63 = vsub.f32 1.0, %v763_v43  ;;  %v1212_v59 = vsub.f32 %v294_v52, %v412_v54  ;;  %v632_v57 = vld [vmem:[%s1363_s2 + $0x28] sm:$0xff] }
 0x17b   :  { %v767_v5 = vpop.eup %766  ;;  %v529_v30 = vmul.f32 %v513_v44, %v513_v44  ;;  %v499_v25 = vsub.f32 1.0, %v765_v46  ;;  %v477_v4 = vmul.f32 1.442695, %v454_v51  ;;  %v479_v11 = vmul.f32 1.442695, %v455_v21 }
 0x17c   :  { %v769_v53 = vpop.eup %768  ;;  %661 = vst.msk [vmem:[%s1363_s2 + $0x8] sm:$0xff] %vm59_vm7, %v644_v47  ;;  %v543_v10 = vmul.f32 %v527_v60, %v1174_v37  ;;  %v514_v29 = vmax.f32 %v498_v63, 0.0  ;;  %v282_v15 = vmul.f32 0.6931472, %v767_v5  ;;  %v456_v16 = vsub.f32 0.0, %v1212_v59 }
 0x17d   :  { %v771_v8 = vpop.eup %770  ;;  %v545_v19 = vmul.f32 %v529_v30, %v1176_v39  ;;  %v515_v20 = vmax.f32 %v499_v25, 0.0  ;;  %v284_v23 = vmul.f32 0.6931472, %v769_v53  ;;  %774 = vpow2.f32 %v477_v4  ;;  %v418_v9 = vpop.xlane.xlu1 %417 }
 0x17e   :  { %v421_v28 = vpop.xlane.xlu0 %420  ;;  %v643_v31 = vadd.f32 %v627_v27, %v543_v10  ;;  %v530_v6 = vmul.f32 %v514_v29, %v514_v29  ;;  %v500_v56 = vsub.f32 1.0, %v771_v8  ;;  %776 = vpow2.f32 %v479_v11 }
 0x17f   :  { %v645_v37 = vadd.f32 %v629_v12, %v545_v19  ;;  %v531_v33 = vmul.f32 %v515_v20, %v515_v20  ;;  %v481_v34 = vmul.f32 1.442695, %v456_v16  ;;  %v1230_v35 = vsub.f32 %v295_v41, %v415_v45 }
 0x180   :  { %660 = vst.msk [vmem:[%s1363_s2] sm:$0xff] %vm59_vm7, %v643_v31  ;;  %v546_v39 = vmul.f32 %v530_v6, %v1182_v17  ;;  %v516_v52 = vmax.f32 %v500_v56, 0.0  ;;  %v1240_v14 = vsub.f32 %v296_v58, %v418_v9  ;;  %v297_v38 = vadd.f32 %v278_v22, %v995_v62  ;;  %v635_v31 = vld [vmem:[%s1363_s2 + $0x40] sm:$0xff] }
 0x181   :  { %662 = vst.msk [vmem:[%s1363_s2 + $0x10] sm:$0xff] %vm59_vm7, %v645_v37  ;;  %v547_v1 = vmul.f32 %v531_v33, %v1184_v26  ;;  %778 = vpow2.f32 %v481_v34  ;;  %v457_v40 = vsub.f32 0.0, %v1230_v35  ;;  %v298_v17 = vadd.f32 %v280_v2, %v993_v61  ;;  %v424_v50 = vpop.xlane.xlu1 %423 }
 0x182   :  { %v646_v55 = vadd.f32 %v630_v32, %v546_v39  ;;  %v532_v41 = vmul.f32 %v516_v52, %v516_v52  ;;  %v458_v58 = vsub.f32 0.0, %v1240_v14  ;;  %v1251_v0 = vsub.f32 %v297_v38, %v421_v28  ;;  %v427_v43 = vpop.xlane.xlu0 %426  ;;  %v636_v52 = vld [vmem:[%s1363_s2 + $0x48] sm:$0xff] }
 0x183   :  { %v773_v18 = vpop.eup %772  ;;  %v647_v62 = vadd.f32 %v631_v36, %v547_v1  ;;  %v483_v26 = vmul.f32 1.442695, %v457_v40  ;;  %v1256_v22 = vsub.f32 %v298_v17, %v424_v50  ;;  %v299_v51 = vadd.f32 %v282_v15, %v1003_v7 }
 0x184   :  { %v501_v42 = vsub.f32 1.0, %v773_v18  ;;  %663 = vst.msk [vmem:[%s1363_s2 + $0x18] sm:$0xff] %vm59_vm7, %v646_v55  ;;  %v548_v61 = vmul.f32 %v532_v41, %v1190_v48  ;;  %v485_v44 = vmul.f32 1.442695, %v458_v58  ;;  %v459_v2 = vsub.f32 0.0, %v1251_v0  ;;  %v637_v58 = vld [vmem:[%s1363_s2 + $0x50] sm:$0xff] }
 0x185   :  { %664 = vst.msk [vmem:[%s1363_s2 + $0x20] sm:$0xff] %vm59_vm7, %v647_v62  ;;  %780 = vpow2.f32 %v483_v26  ;;  %v460_v54 = vsub.f32 0.0, %v1256_v22  ;;  %v300_v45 = vadd.f32 %v284_v23, %v997_v3  ;;  %v430_v46 = vpop.xlane.xlu1 %429  ;;  %v1271_v60 = vsub.f32 %v299_v51, %v427_v43  ;;  %v633_v3 = vld [vmem:[%s1363_s2 + $0x30] sm:$0xff]  ;;  %v638_v26 = vld [vmem:[%s1363_s2 + $0x58] sm:$0xff] }
 0x186   :  { %v517_v21 = vmax.f32 %v501_v42, 0.0  ;;  %v648_v47 = vadd.f32 %v632_v57, %v548_v61  ;;  %782 = vpow2.f32 %v485_v44  ;;  %v487_v48 = vmul.f32 1.442695, %v459_v2 }
 0x187   :  { %v775_v63 = vpop.eup %774  ;;  %v489_v7 = vmul.f32 1.442695, %v460_v54  ;;  %v1273_v27 = vsub.f32 %v300_v45, %v430_v46  ;;  %v461_v4 = vsub.f32 0.0, %v1271_v60  ;;  %v639_v54 = vld [vmem:[%s1363_s2 + $0x60] sm:$0xff] }
 0x188   :  { %v533_v5 = vmul.f32 %v517_v21, %v517_v21  ;;  %v777_v30 = vpop.eup %776  ;;  %665 = vst.msk [vmem:[%s1363_s2 + $0x28] sm:$0xff] %vm59_vm7, %v648_v47  ;;  %v502_v25 = vsub.f32 1.0, %v775_v63  ;;  %784 = vpow2.f32 %v487_v48  ;;  %v640_v48 = vld [vmem:[%s1363_s2 + $0x68] sm:$0xff] }
 0x189   :  { %v503_v53 = vsub.f32 1.0, %v777_v30  ;;  %786 = vpow2.f32 %v489_v7  ;;  %v462_v10 = vsub.f32 0.0, %v1273_v27  ;;  %v491_v29 = vmul.f32 1.442695, %v461_v4  ;;  %v642_v4 = vld [vmem:[%s1363_s2 + $0x78] sm:$0xff] }
 0x18a   :  { %v549_v11 = vmul.f32 %v533_v5, %v1194_v24  ;;  %v518_v12 = vmax.f32 %v502_v25, 0.0  ;;  %v634_v24 = vld [vmem:[%s1363_s2 + $0x38] sm:$0xff] }
 0x18b   :  { %v779_v15 = vpop.eup %778  ;;  %v519_v8 = vmax.f32 %v503_v53, 0.0  ;;  %v493_v19 = vmul.f32 1.442695, %v462_v10  ;;  %788 = vpow2.f32 %v491_v29 }
 0x18c   :  { %v649_v16 = vadd.f32 %v633_v3, %v549_v11  ;;  %v534_v20 = vmul.f32 %v518_v12, %v518_v12  ;;  %v504_v23 = vsub.f32 1.0, %v779_v15  ;;  %v641_v3 = vld [vmem:[%s1363_s2 + $0x70] sm:$0xff] }
 0x18d   :  { %v535_v9 = vmul.f32 %v519_v8, %v519_v8  ;;  %790 = vpow2.f32 %v493_v19 }
 0x18e   :  { %666 = vst.msk [vmem:[%s1363_s2 + $0x30] sm:$0xff] %vm59_vm7, %v649_v16  ;;  %v550_v28 = vmul.f32 %v534_v20, %v1200_v13  ;;  %v520_v6 = vmax.f32 %v504_v23, 0.0 }
 0x18f   :  { %v781_v56 = vpop.eup %780  ;;  %v551_v37 = vmul.f32 %v535_v9, %v1205_v49 }
 0x190   :  { %v783_v32 = vpop.eup %782  ;;  %v650_v33 = vadd.f32 %v634_v24, %v550_v28  ;;  %v536_v34 = vmul.f32 %v520_v6, %v520_v6  ;;  %v505_v39 = vsub.f32 1.0, %v781_v56 }
 0x191   :  { %v651_v36 = vadd.f32 %v635_v31, %v551_v37  ;;  %v506_v38 = vsub.f32 1.0, %v783_v32 }
 0x192   :  { %v785_v1 = vpop.eup %784  ;;  %667 = vst.msk [vmem:[%s1363_s2 + $0x38] sm:$0xff] %vm59_vm7, %v650_v33  ;;  %v552_v13 = vmul.f32 %v536_v34, %v1212_v59  ;;  %v521_v40 = vmax.f32 %v505_v39, 0.0 }
 0x193   :  { %v787_v49 = vpop.eup %786  ;;  %668 = vst.msk [vmem:[%s1363_s2 + $0x40] sm:$0xff] %vm59_vm7, %v651_v36  ;;  %v522_v17 = vmax.f32 %v506_v38, 0.0  ;;  %v507_v50 = vsub.f32 1.0, %v785_v1 }
 0x194   :  { %v652_v18 = vadd.f32 %v636_v52, %v552_v13  ;;  %v537_v55 = vmul.f32 %v521_v40, %v521_v40  ;;  %v508_v41 = vsub.f32 1.0, %v787_v49 }
 0x195   :  { %v538_v62 = vmul.f32 %v522_v17, %v522_v17  ;;  %v523_v57 = vmax.f32 %v507_v50, 0.0  ;;  %v789_v42 = vpop.eup %788 }
 0x196   :  { %669 = vst.msk [vmem:[%s1363_s2 + $0x48] sm:$0xff] %vm59_vm7, %v652_v18  ;;  %v553_v59 = vmul.f32 %v537_v55, %v1230_v35  ;;  %v524_v43 = vmax.f32 %v508_v41, 0.0  ;;  %v509_v51 = vsub.f32 1.0, %v789_v42 }
 0x197   :  { %v791_v61 = vpop.eup %790  ;;  %v554_v44 = vmul.f32 %v538_v62, %v1240_v14  ;;  %v539_v2 = vmul.f32 %v523_v57, %v523_v57 }
 0x198   :  { %v653_v21 = vadd.f32 %v637_v58, %v553_v59  ;;  %v540_v45 = vmul.f32 %v524_v43, %v524_v43  ;;  %v510_v46 = vsub.f32 1.0, %v791_v61  ;;  %v525_v63 = vmax.f32 %v509_v51, 0.0 }
 0x199   :  { %v654_v47 = vadd.f32 %v638_v26, %v554_v44  ;;  %v555_v35 = vmul.f32 %v539_v2, %v1251_v0 }
 0x19a   :  { %670 = vst.msk [vmem:[%s1363_s2 + $0x50] sm:$0xff] %vm59_vm7, %v653_v21  ;;  %v556_v14 = vmul.f32 %v540_v45, %v1256_v22  ;;  %v526_v5 = vmax.f32 %v510_v46, 0.0  ;;  %v541_v0 = vmul.f32 %v525_v63, %v525_v63 }
 0x19b   :  { %671 = vst.msk [vmem:[%s1363_s2 + $0x58] sm:$0xff] %vm59_vm7, %v654_v47  ;;  %v655_v7 = vadd.f32 %v639_v54, %v555_v35 }
 0x19c   :  { %v656_v30 = vadd.f32 %v640_v48, %v556_v14  ;;  %v542_v25 = vmul.f32 %v526_v5, %v526_v5  ;;  %v557_v22 = vmul.f32 %v541_v0, %v1271_v60 }
 0x19d   :  { %672 = vst.msk [vmem:[%s1363_s2 + $0x60] sm:$0xff] %vm59_vm7, %v655_v7 }
 0x19e   :  { %673 = vst.msk [vmem:[%s1363_s2 + $0x68] sm:$0xff] %vm59_vm7, %v656_v30  ;;  %v558_v11 = vmul.f32 %v542_v25, %v1273_v27  ;;  %v657_v53 = vadd.f32 %v641_v3, %v557_v22 }
 0x1a0   :  { %v658_v10 = vadd.f32 %v642_v4, %v558_v11  ;;  %674 = vst.msk [vmem:[%s1363_s2 + $0x70] sm:$0xff] %vm59_vm7, %v657_v53 }
 0x1a2   :  { %675 = vst.msk [vmem:[%s1363_s2 + $0x78] sm:$0xff] %vm59_vm7, %v658_v10 }

</bundles_post_ra>
